<compile_context>
chip_gen: v5e
topology: v5e:2x2
jax: 0.10.0
libtpu: 0.0.40
codegen_flags: <defaults>
</compile_context>

<pallas_src>
import jax
import jax.numpy as jnp
from jax.experimental import pallas as pl
from jax.experimental.pallas import tpu as pltpu

_LANES = 128


def _hardswish_kernel(x_ref, o_ref):
    x = x_ref[...]
    # hardswish(x) = x * clamp(x + 3, 0, 6) / 6
    clip = jnp.clip(x + 3.0, 0.0, 6.0) * (1.0 / 6.0)
    o_ref[...] = (x * clip).astype(o_ref.dtype)


def hardswish(x: jax.Array, *, target_block_bytes: int = 4 * 1024 * 1024) -> jax.Array:
    """HardSwish: x * clamp(x + 3, 0, 6) / 6, matching the PyTorch module."""
    orig_shape = x.shape
    dtype = x.dtype
    total = x.size
    itemsize = jnp.dtype(dtype).itemsize

    # dtype-aware native sublane packing: f32 -> 8, bf16/f16 -> 16, int8/fp8 -> 32.
    min_sublanes = max(8, 32 // itemsize)
    granule = min_sublanes * _LANES

    x_flat = jnp.ravel(x)
    padded = pl.cdiv(total, granule) * granule
    needs_pad = padded != total
    if needs_pad:
        # Rare for conv activations (sizes are almost always multiples of the granule).
        # TODO(synk): fold the ragged tail into the kernel with an in-kernel mask to
        # avoid this extra pad/slice HBM pass entirely.
        x_flat = jnp.pad(x_flat, (0, padded - total))

    rows = padded // _LANES
    x2d = x_flat.reshape(rows, _LANES)

    # Large row tile (~target_block_bytes per block), rounded down to the dtype's
    # native sublane multiple. The grid uses cdiv and Pallas masks the partial
    # last block (elementwise => safe); since both `rows` and `tr` are multiples
    # of the sublane granule, partial blocks stay packing-aligned.
    target_rows = max(min_sublanes, target_block_bytes // (_LANES * itemsize))
    tr = min(target_rows, rows)
    tr = max(min_sublanes, (tr // min_sublanes) * min_sublanes)

    grid = (pl.cdiv(rows, tr),)

    out2d = pl.pallas_call(
        _hardswish_kernel,
        out_shape=jax.ShapeDtypeStruct((rows, _LANES), dtype),
        grid_spec=pltpu.PrefetchScalarGridSpec(
            num_scalar_prefetch=0,
            grid=grid,
            in_specs=[pl.BlockSpec((tr, _LANES), lambda i: (i, 0))],
            out_specs=pl.BlockSpec((tr, _LANES), lambda i: (i, 0)),
        ),
        compiler_params=pltpu.CompilerParams(
            # Keep the grid parallel so v7x's two TensorCores both stream.
            dimension_semantics=("parallel",),
            # 4 MiB blocks double-buffered for in+out = 16 MiB; raise v5e's
            # default 16 MiB scoped limit so the pipeline has headroom.
            vmem_limit_bytes=32 * 1024 * 1024,
        ),
    )(x2d)

    out_flat = out2d.reshape(-1)
    if needs_pad:
        out_flat = out_flat[:total]
    return out_flat.reshape(orig_shape)


if __name__ == "__main__":
    key = jax.random.PRNGKey(0)
    # NCHW input, small shape consistent with a MobileNetV3 activation.
    x = jax.random.normal(key, (2, 4, 16, 16), dtype=jnp.float32) * 4.0

    y = jax.block_until_ready(hardswish(x))
    ref = x * jnp.clip(x + 3.0, 0.0, 6.0) / 6.0
    assert y.shape == x.shape and y.dtype == x.dtype
    assert jnp.allclose(y, ref, atol=1e-6, rtol=1e-6)

    # Ragged bf16 case: exercises the dtype-aware granule (16x128) and pad path.
    xb = (jax.random.normal(jax.random.PRNGKey(1), (2, 3, 15, 15)) * 4.0).astype(
        jnp.bfloat16
    )
    yb = jax.block_until_ready(hardswish(xb))
    xbf = xb.astype(jnp.float32)
    refb = xbf * jnp.clip(xbf + 3.0, 0.0, 6.0) / 6.0
    assert yb.shape == xb.shape and yb.dtype == xb.dtype
    assert jnp.allclose(yb.astype(jnp.float32), refb, atol=5e-2, rtol=5e-2)

    print("KERNEL_OK")
</pallas_src>

<mosaic_0001>
module attributes {stable_mosaic.version = 11 : i64} {
  func.func @_hardswish_kernel(%arg0: i32, %arg1: memref<16x128xf32, #tpu.memory_space<vmem>>, %arg2: memref<16x128xf32, #tpu.memory_space<vmem>>) attributes {dimension_semantics = [#tpu.dimension_semantics<parallel>], iteration_bounds = array<i64: 1>, scalar_prefetch = 0 : i64, scratch_operands = 0 : i64, tpu.core_type = #tpu.core_type<tc>, window_params = [{transform_indices = @transform_0, window_bounds = array<i64: 16, 128>}, {transform_indices = @transform_1, window_bounds = array<i64: 16, 128>}]} {
    %c0 = arith.constant 0 : index
    %c0_0 = arith.constant 0 : index
    %0 = vector.load %arg1[%c0, %c0_0] : memref<16x128xf32, #tpu.memory_space<vmem>>, vector<16x128xf32>
    %cst = arith.constant 3.000000e+00 : f32
    %1 = vector.broadcast %cst : f32 to vector<16x128xf32>
    %2 = arith.addf %0, %1 : vector<16x128xf32>
    %cst_1 = arith.constant 0.000000e+00 : f32
    %cst_2 = arith.constant 6.000000e+00 : f32
    %3 = vector.broadcast %cst_1 : f32 to vector<16x128xf32>
    %4 = arith.maximumf %3, %2 : vector<16x128xf32>
    %5 = vector.broadcast %cst_2 : f32 to vector<16x128xf32>
    %6 = arith.minimumf %5, %4 : vector<16x128xf32>
    %cst_3 = arith.constant 0.166666672 : f32
    %7 = vector.broadcast %cst_3 : f32 to vector<16x128xf32>
    %8 = arith.mulf %6, %7 : vector<16x128xf32>
    %9 = arith.mulf %0, %8 : vector<16x128xf32>
    %c0_4 = arith.constant 0 : index
    %c0_5 = arith.constant 0 : index
    %10 = vector.load %arg2[%c0_4, %c0_5] : memref<16x128xf32, #tpu.memory_space<vmem>>, vector<16x128xf32>
    tpu.vector_store %arg2[%c0_4, %c0_5], %9 {strides = array<i32>} : memref<16x128xf32, #tpu.memory_space<vmem>>, vector<16x128xf32>,
    return
  }
  func.func @transform_0(%arg0: i32) -> (i32, i32) {
    %c0_i32 = arith.constant 0 : i32
    %c0_i32_0 = arith.constant 0 : i32
    return %arg0, %c0_i32 : i32, i32
  }
  func.func @transform_1(%arg0: i32) -> (i32, i32) {
    %c0_i32 = arith.constant 0 : i32
    %c0_i32_0 = arith.constant 0 : i32
    return %arg0, %c0_i32 : i32, i32
  }
}

</mosaic_0001>

<bundles_post_ra>
// kernel: tpu_custom_call.1
= control target key start
LH: loop header
LB: loop body
LE: loop exit
PB: predicated region body
PF: predicated region fallthrough
CT: control target
= control target key end

     0   :  { %6 = vsyncpa [#allocation3], 0  ;;  %s134_s0 = inlined_call_operand.hbm [shape: f32[16,128], index: 0, kind: input, shape index: {}]   ;;  %s135_s1 = inlined_call_operand.hbm [shape: f32[16,128], index: 1, kind: output, shape index: {}]  }
   0x1   :  { %7 = vsyncpa [#allocation4], 0  ;;  %s12_s8 = sshll.u32 %s134_s0, 4  ;;  %s114_s9 = smov [#allocation2]   ;;  %s13_s8 = int_to_ptr.hbm [resolvable:$true] %s12_s8 }
   0x2   :  { %s14_s10 = sshll.u32 %s114_s9, 4  ;;  %s115_s11 = smov 128   ;;  %s15_s10 = int_to_ptr.vmem [resolvable:$true] %s14_s10 }
   0x3   :  { %s116_s12 = smov 8  }
   0x4   :  { %20 = dma.hbm_to_vmem [thread:$0]  %s13_s8, 256, %s15_s10, [#allocation3], %s115_s11, %s115_s11, %s116_s12  }
   0x5   :  { %110 = dma.done.wait [#allocation3], 256  }
   0x6   :  { %111 = vsyncadd [#allocation3], 4294967040  ;;  %v25_v0 = vld [vmem:[#allocation2] sm:$0xff]  ;;  %v26_v1 = vld [vmem:[#allocation2 + $0x8] sm:$0xff]  ;;  %s117_s0 = smov [#allocation5]   ;;  %s45_s16 = sshll.u32 %s135_s1, 4  ;;  %s46_s16 = int_to_ptr.hbm [resolvable:$true] %s45_s16 }
   0x7   :  { %v27_v2 = vadd.f32 3.0, %v25_v0  ;;  %v28_v3 = vadd.f32 3.0, %v26_v1  ;;  %s43_s13 = sshll.u32 %s117_s0, 4  ;;  %s44_s13 = int_to_ptr.vmem [resolvable:$true] %s43_s13 }
   0x9   :  { %v29_v4 = vmax.f32 %v27_v2, 0.0  ;;  %v30_v5 = vmax.f32 %v28_v3, 0.0 }
   0xb   :  { %v31_v6 = vmin.f32 %v29_v4, 6.0  ;;  %v32_v7 = vmin.f32 %v30_v5, 6.0 }
   0xd   :  { %v33_v8 = vmul.f32 0.16666667, %v31_v6  ;;  %v34_v9 = vmul.f32 0.16666667, %v32_v7 }
   0xf   :  { %v35_v10 = vmul.f32 %v33_v8, %v25_v0  ;;  %v36_v11 = vmul.f32 %v34_v9, %v26_v1 }
  0x11   :  { %37 = vst [vmem:[#allocation5] sm:$0xff] %v35_v10 }
  0x12   :  { %38 = vst [vmem:[#allocation5 + $0x8] sm:$0xff] %v36_v11 }
  0x13   :  { %51 = dma.vmem_to_hbm [thread:$0]  %s44_s13, 256, %s46_s16, [#allocation4], %s115_s11, %s115_s11, %s116_s12  }
  0x14   :  { %112 = dma.done.wait [#allocation4], 256  }
  0x15   :  { %113 = vsyncadd [#allocation4], 4294967040 }
  0x16   :  { %56 = vsyncpa [#allocation3], 1 }
  0x17   :  { %57 = vsyncpa [#allocation4], 1 }

</bundles_post_ra>
